<compile_context>
chip_gen: v7x
topology: tpu7x:2x2x1
jax: 0.10.0
libtpu: 0.0.40
codegen_flags: <defaults>
</compile_context>

<pallas_src>
import jax
import jax.numpy as jnp
from jax.experimental import pallas as pl
from jax.experimental.pallas import tpu as pltpu


# --------------------------------------------------------------------------- #
# Kernel
# --------------------------------------------------------------------------- #
def _rwpe_kernel(adj_ref, w_ref, b_ref, out_ref):
    # adj_ref : (P, N)  bb adjacency matrices stacked along rows, P = bb * N
    # w_ref   : (k, E)  out_map.weight transposed
    # b_ref   : (1, E)  out_map.bias
    # out_ref : (P, E)
    p_dim, n = adj_ref.shape
    bb = p_dim // n
    k = w_ref.shape[0]
    inv_n = 1.0 / float(n)

    tall = adj_ref[...].astype(jnp.float32)                            # (P, N)

    # degrees = adjs.sum(dim=2).clamp(min=1): row sums over the LAST axis
    # (torch semantics, also for asymmetric adjacencies).  Laid out along
    # lanes ((1, P)) so it directly column-scales the packed matrix.
    tall_t = jnp.transpose(tall)                                        # (N, P)
    deg_col = jnp.maximum(jnp.sum(tall_t, axis=0, keepdims=True), 1.0)  # (1, P)
    recip_col = 1.0 / deg_col                                           # (1, P)

    rr = jax.lax.broadcasted_iota(jnp.int32, (p_dim, p_dim), 0)
    cc = jax.lax.broadcasted_iota(jnp.int32, (p_dim, p_dim), 1)

    if bb > 1:
        # Block-diagonal packing.  rep[j, c] = 1 iff (c mod N) == j, with the
        # 1/deg column scale folded in, so  tall @ rep  places a scaled copy of
        # each batch's RW in every column block; the block mask then zeros
        # everything off the diagonal.  floor((x+0.5)/N) == x // N exactly for
        # the small integers involved (avoids vector integer division).
        jj = jax.lax.broadcasted_iota(jnp.int32, (n, p_dim), 0).astype(jnp.float32)
        cj = jax.lax.broadcasted_iota(jnp.int32, (n, p_dim), 1).astype(jnp.float32)
        c_mod = cj - jnp.floor((cj + 0.5) * inv_n) * float(n)
        rep = (c_mod == jj).astype(jnp.float32) * recip_col             # (N, P)
        tiled = jnp.dot(tall, rep, preferred_element_type=jnp.float32)  # (P, P)

        r_blk = jnp.floor((rr.astype(jnp.float32) + 0.5) * inv_n)
        c_blk = jnp.floor((cc.astype(jnp.float32) + 0.5) * inv_n)
        rw = jnp.where(r_blk == c_blk, tiled, 0.0)                      # (P, P)
    else:
        rw = tall * recip_col                                           # (N, N)

    rw_t = jnp.transpose(rw)                                            # (P, P)
    w = w_ref[...]                                                      # (k, E)

    # diag(RW^1) via an identity mask (the only place a full eye mask is needed)
    diag = jnp.sum(jnp.where(rr == cc, rw, 0.0), axis=1, keepdims=True)  # (P, 1)

    # out = sum_p diag(RW^p) (outer) W_t[p] : rank-1 VPU updates overlapping
    # the serial MXU power chain.
    acc = diag * w[0:1, :]                                              # (P, E)

    m = rw                                                              # RW^1
    for pw in range(2, k + 1):
        # m holds RW^{pw-1};  diag(RW^pw) = rowsum(RW^{pw-1} o RW^T).
        # Off-block entries are zero in both factors, so the packed rowsum
        # equals the per-batch diagonal.
        diag = jnp.sum(m * rw_t, axis=1, keepdims=True)                 # (P, 1)
        acc = acc + diag * w[pw - 1:pw, :]
        if pw < k:                                                      # RW^k never formed
            # f32 operands: Mosaic keeps f32 matmuls in f32 (no implicit
            # bf16 demotion), preserving the power-chain accuracy.
            m = jnp.dot(m, rw, preferred_element_type=jnp.float32)

    out_ref[...] = (acc + b_ref[...]).astype(out_ref.dtype)


# --------------------------------------------------------------------------- #
# Wrapper / tiling heuristics
# --------------------------------------------------------------------------- #
def _divisors(b):
    return [d for d in range(1, b + 1) if b % d == 0]


def _feasible_bbs(b, n):
    # Second-to-last block dim (bb*N) must be a multiple of 8, or the block
    # must span the full array (bb == B).
    feas = [d for d in _divisors(b) if (d * n) % 8 == 0 or d == b]
    return feas if feas else [b]


def _hw_params():
    """(MXU-native pack width, min grid steps, VMEM byte cap) for this chip."""
    pack_target, min_steps = 256, 1
    cap = 48 * 1024 * 1024                     # conservative fallback
    try:
        kind = jax.devices()[0].device_kind.lower()
        if "v5" in kind:
            pack_target = 128                  # 128x128 MXU on v5*
        if "7" in kind:
            min_steps = 2                      # v7x: 2 TensorCores / chip
    except Exception:
        pass
    try:
        cap_bytes = getattr(pltpu.get_tpu_info(), "vmem_capacity_bytes", None)
        if cap_bytes:
            cap = int(0.8 * cap_bytes)
    except Exception:
        pass
    return pack_target, min_steps, cap


def _pick_block_b(b, n, pack_target, min_steps):
    feas = _feasible_bbs(b, n)

    def best(cands):
        within = [d for d in cands if d * n <= pack_target]
        return max(within) if within else min(cands)

    if min_steps > 1:
        multi = [d for d in feas if b // d >= min_steps]
        if multi:
            return best(multi)
    return best(feas)


def _vmem_estimate(bb, n, e, k):
    p = bb * n
    return (2 * p * n * 4 + 2 * p * e * 4      # double-buffered in/out blocks
            + 10 * p * p * 4                   # resident (P,P) f32/i32 temporaries
            + 2 * p * n * 4 + 3 * p * e * 4    # tall/tall_t, accumulators
            + 2 * (k * e + e) * 4)             # weights / bias


def random_walk_pe(adjs, weight, bias, *, k, block_b=None):
    """adjs: (B, N, N); weight: (E, k) (PyTorch nn.Linear layout); bias: (E,)."""
    B, N, _ = adjs.shape
    E = weight.shape[0]
    assert weight.shape == (E, k)

    tall = jnp.asarray(adjs, jnp.float32).reshape(B * N, N)   # batches stacked on rows
    w_t = jnp.asarray(weight, jnp.float32).T                  # (k, E)
    b2d = jnp.asarray(bias, jnp.float32).reshape(1, E)        # (1, E)

    pack_target, min_steps, vmem_cap = _hw_params()
    bb = block_b if block_b is not None else _pick_block_b(B, N, pack_target, min_steps)
    assert B % bb == 0, "block_b must divide the batch size"

    # Shrink bb (next smaller feasible divisor) while the estimated working set
    # exceeds the VMEM cap, instead of silently clamping the scoped limit.
    feas = _feasible_bbs(B, N)
    while bb > 1 and _vmem_estimate(bb, N, E, k) > vmem_cap:
        smaller = [d for d in feas if d < bb]
        if not smaller:
            break
        bb = max(smaller)
    # TODO(synk): for very large N (bb == 1 still above the cap, e.g. N >= 2k on
    # v7x's 64 MiB VMEM) store RW / RW^T in bf16 and keep only the matmul
    # accumulation in f32 once the tolerance impact is validated.

    P = bb * N
    grid = (B // bb,)
    est = _vmem_estimate(bb, N, E, k)
    vmem_limit = int(min(vmem_cap, max(2 * est, 32 * 1024 * 1024)))

    steps = B // bb
    flops = steps * (max(k - 2, 0) * 2 * P * P * P        # power-chain matmuls
                     + (2 * P * N * P if bb > 1 else 0)   # packing matmul
                     + max(k - 1, 0) * 3 * P * P          # Hadamard diag rowsums
                     + k * 3 * P * E)                     # rank-1 projection
    bytes_accessed = 4 * (B * N * N + B * N * E + k * E + E)

    out2d = pl.pallas_call(
        _rwpe_kernel,
        out_shape=jax.ShapeDtypeStruct((B * N, E), jnp.float32),
        grid_spec=pltpu.PrefetchScalarGridSpec(
            num_scalar_prefetch=0,
            grid=grid,
            in_specs=[
                pl.BlockSpec((P, N), lambda g: (g, 0)),
                pl.BlockSpec((k, E), lambda g: (0, 0)),
                pl.BlockSpec((1, E), lambda g: (0, 0)),
            ],
            out_specs=pl.BlockSpec((P, E), lambda g: (g, 0)),
        ),
        compiler_params=pltpu.CompilerParams(
            dimension_semantics=("parallel",),
            vmem_limit_bytes=vmem_limit),
        cost_estimate=pl.CostEstimate(
            flops=int(flops), transcendentals=0,
            bytes_accessed=int(bytes_accessed)),
    )(tall, w_t, b2d)

    return out2d.reshape(B, N, E)


# --------------------------------------------------------------------------- #
# Pure-JAX reference (mirrors the PyTorch forward at highest precision)
# --------------------------------------------------------------------------- #
def _reference(adjs, weight, bias, *, k):
    hi = jax.lax.Precision.HIGHEST
    adjs = adjs.astype(jnp.float32)
    deg = jnp.maximum(adjs.sum(axis=2), 1.0)                   # (B, N)
    d_inv = jax.vmap(jnp.diag)(1.0 / deg)                      # (B, N, N)
    rw = jnp.einsum("bij,bjk->bik", adjs, d_inv, precision=hi)
    m = rw
    diags = [jnp.diagonal(m, axis1=1, axis2=2)]
    for _ in range(k - 1):
        m = jnp.einsum("bij,bjk->bik", m, rw, precision=hi)
        diags.append(jnp.diagonal(m, axis1=1, axis2=2))
    pos = jnp.stack(diags, axis=-1)                            # (B, N, k)
    return jnp.einsum("bnk,ek->bne", pos, weight, precision=hi) + bias


if __name__ == "__main__":
    B, N, k, E = 4, 16, 8, 32

    key = jax.random.PRNGKey(0)
    k_adj, k_w, k_b = jax.random.split(key, 3)

    # random 0/1 adjacency (NOT necessarily symmetric), no self loops —
    # exercises the directed-graph degree semantics as well.
    a = (jax.random.uniform(k_adj, (B, N, N)) > 0.5).astype(jnp.float32)
    adjs = a * (1.0 - jnp.eye(N, dtype=jnp.float32))

    # deterministic nn.Linear(k, E)-style params: U(-1/sqrt(k), 1/sqrt(k))
    bound = 1.0 / jnp.sqrt(jnp.float32(k))
    weight = jax.random.uniform(k_w, (E, k), jnp.float32, -bound, bound)
    bias = jax.random.uniform(k_b, (E,), jnp.float32, -bound, bound)

    out = random_walk_pe(adjs, weight, bias, k=k)
    out = jax.block_until_ready(out)

    ref = _reference(adjs, weight, bias, k=k)
    assert out.shape == (B, N, E)
    assert jnp.allclose(out, ref, atol=1e-4, rtol=1e-4), (
        "max abs diff = %g" % float(jnp.max(jnp.abs(out - ref))))

    print("KERNEL_OK")
</pallas_src>

<mosaic_0001>
module attributes {stable_mosaic.version = 11 : i64} {
  func.func @_rwpe_kernel(%arg0: i32, %arg1: memref<64x16xf32, #tpu.memory_space<vmem>>, %arg2: memref<8x32xf32, #tpu.memory_space<vmem>>, %arg3: memref<1x32xf32, #tpu.memory_space<vmem>>, %arg4: memref<64x32xf32, #tpu.memory_space<vmem>>) attributes {dimension_semantics = [#tpu.dimension_semantics<parallel>], iteration_bounds = array<i64: 1>, scalar_prefetch = 0 : i64, scratch_operands = 0 : i64, tpu.core_type = #tpu.core_type<tc>, window_params = [{transform_indices = @transform_0, window_bounds = array<i64: 64, 16>}, {pipeline_mode = #tpu.pipeline_mode<synchronous>, transform_indices = @transform_1, window_bounds = array<i64: 8, 32>}, {pipeline_mode = #tpu.pipeline_mode<synchronous>, transform_indices = @transform_2, window_bounds = array<i64: 1, 32>}, {transform_indices = @transform_3, window_bounds = array<i64: 64, 32>}]} {
    %c0 = arith.constant 0 : index
    %c0_0 = arith.constant 0 : index
    %0 = vector.load %arg1[%c0, %c0_0] : memref<64x16xf32, #tpu.memory_space<vmem>>, vector<64x16xf32>
    %1 = tpu.transpose %0, [1, 0] : vector<64x16xf32> -> vector<16x64xf32>
    %cst = arith.constant dense<0.000000e+00> : vector<64xf32>
    %2 = vector.multi_reduction <add>, %1, %cst [0] : vector<16x64xf32> to vector<64xf32>
    %3 = vector.shape_cast %2 : vector<64xf32> to vector<1x64xf32>
    %cst_1 = arith.constant 1.000000e+00 : f32
    %4 = vector.broadcast %cst_1 : f32 to vector<1x64xf32>
    %5 = arith.maximumf %3, %4 : vector<1x64xf32>
    %cst_2 = arith.constant 1.000000e+00 : f32
    %6 = vector.broadcast %cst_2 : f32 to vector<1x64xf32>
    %7 = arith.divf %6, %5 : vector<1x64xf32>
    %8 = tpu.iota {dimensions = array<i32: 0>} : vector<64x64xi32>
    %9 = tpu.iota {dimensions = array<i32: 1>} : vector<64x64xi32>
    %10 = tpu.iota {dimensions = array<i32: 0>} : vector<16x64xi32>
    %11 = arith.sitofp %10 : vector<16x64xi32> to vector<16x64xf32>
    %12 = tpu.iota {dimensions = array<i32: 1>} : vector<16x64xi32>
    %13 = arith.sitofp %12 : vector<16x64xi32> to vector<16x64xf32>
    %cst_3 = arith.constant 5.000000e-01 : f32
    %14 = vector.broadcast %cst_3 : f32 to vector<16x64xf32>
    %15 = arith.addf %13, %14 : vector<16x64xf32>
    %cst_4 = arith.constant 6.250000e-02 : f32
    %16 = vector.broadcast %cst_4 : f32 to vector<16x64xf32>
    %17 = arith.mulf %15, %16 : vector<16x64xf32>
    %18 = math.floor %17 : vector<16x64xf32>
    %cst_5 = arith.constant 1.600000e+01 : f32
    %19 = vector.broadcast %cst_5 : f32 to vector<16x64xf32>
    %20 = arith.mulf %18, %19 : vector<16x64xf32>
    %21 = arith.subf %13, %20 : vector<16x64xf32>
    %22 = arith.cmpf oeq, %21, %11 : vector<16x64xf32>
    %23 = arith.extui %22 : vector<16x64xi1> to vector<16x64xi32>
    %24 = arith.sitofp %23 : vector<16x64xi32> to vector<16x64xf32>
    %25 = vector.broadcast %7 : vector<1x64xf32> to vector<16x64xf32>
    %26 = arith.mulf %24, %25 : vector<16x64xf32>
    %cst_6 = arith.constant dense<0.000000e+00> : vector<64x64xf32>
    %27 = tpu.matmul %0, %26, %cst_6 {dimension_numbers = #tpu.dot_dimension_numbers<[1], [0], [0], [1], [0, 0, 1, 1], [], []>} : vector<64x16xf32>, vector<16x64xf32>, vector<64x64xf32> -> vector<64x64xf32>
    %28 = arith.sitofp %8 : vector<64x64xi32> to vector<64x64xf32>
    %cst_7 = arith.constant 5.000000e-01 : f32
    %29 = vector.broadcast %cst_7 : f32 to vector<64x64xf32>
    %30 = arith.addf %28, %29 : vector<64x64xf32>
    %cst_8 = arith.constant 6.250000e-02 : f32
    %31 = vector.broadcast %cst_8 : f32 to vector<64x64xf32>
    %32 = arith.mulf %30, %31 : vector<64x64xf32>
    %33 = math.floor %32 : vector<64x64xf32>
    %34 = arith.sitofp %9 : vector<64x64xi32> to vector<64x64xf32>
    %cst_9 = arith.constant 5.000000e-01 : f32
    %35 = vector.broadcast %cst_9 : f32 to vector<64x64xf32>
    %36 = arith.addf %34, %35 : vector<64x64xf32>
    %cst_10 = arith.constant 6.250000e-02 : f32
    %37 = vector.broadcast %cst_10 : f32 to vector<64x64xf32>
    %38 = arith.mulf %36, %37 : vector<64x64xf32>
    %39 = math.floor %38 : vector<64x64xf32>
    %40 = arith.cmpf oeq, %33, %39 : vector<64x64xf32>
    %cst_11 = arith.constant 0.000000e+00 : f32
    %41 = vector.broadcast %cst_11 : f32 to vector<64x64xf32>
    %42 = arith.select %40, %27, %41 : vector<64x64xi1>, vector<64x64xf32>
    %43 = tpu.transpose %42, [1, 0] : vector<64x64xf32> -> vector<64x64xf32>
    %c0_12 = arith.constant 0 : index
    %c0_13 = arith.constant 0 : index
    %44 = vector.load %arg2[%c0_12, %c0_13] : memref<8x32xf32, #tpu.memory_space<vmem>>, vector<8x32xf32>
    %45 = arith.cmpi eq, %8, %9 : vector<64x64xi32>
    %cst_14 = arith.constant 0.000000e+00 : f32
    %46 = vector.broadcast %cst_14 : f32 to vector<64x64xf32>
    %47 = arith.select %45, %42, %46 : vector<64x64xi1>, vector<64x64xf32>
    %cst_15 = arith.constant dense<0.000000e+00> : vector<64xf32>
    %48 = vector.multi_reduction <add>, %47, %cst_15 [1] : vector<64x64xf32> to vector<64xf32>
    %49 = vector.shape_cast %48 : vector<64xf32> to vector<64x1xf32>
    %50 = vector.extract_strided_slice %44 {offsets = [0, 0], sizes = [1, 32], strides = [1, 1]} : vector<8x32xf32> to vector<1x32xf32>
    %51 = vector.broadcast %49 : vector<64x1xf32> to vector<64x32xf32>
    %52 = vector.broadcast %50 : vector<1x32xf32> to vector<64x32xf32>
    %53 = arith.mulf %51, %52 : vector<64x32xf32>
    %54 = arith.mulf %42, %43 : vector<64x64xf32>
    %cst_16 = arith.constant dense<0.000000e+00> : vector<64xf32>
    %55 = vector.multi_reduction <add>, %54, %cst_16 [1] : vector<64x64xf32> to vector<64xf32>
    %56 = vector.shape_cast %55 : vector<64xf32> to vector<64x1xf32>
    %57 = vector.extract_strided_slice %44 {offsets = [1, 0], sizes = [1, 32], strides = [1, 1]} : vector<8x32xf32> to vector<1x32xf32>
    %58 = vector.broadcast %56 : vector<64x1xf32> to vector<64x32xf32>
    %59 = vector.broadcast %57 : vector<1x32xf32> to vector<64x32xf32>
    %60 = arith.mulf %58, %59 : vector<64x32xf32>
    %61 = arith.addf %53, %60 : vector<64x32xf32>
    %cst_17 = arith.constant dense<0.000000e+00> : vector<64x64xf32>
    %62 = tpu.matmul %42, %42, %cst_17 {dimension_numbers = #tpu.dot_dimension_numbers<[1], [0], [0], [1], [0, 0, 1, 1], [], []>} : vector<64x64xf32>, vector<64x64xf32>, vector<64x64xf32> -> vector<64x64xf32>
    %63 = arith.mulf %62, %43 : vector<64x64xf32>
    %cst_18 = arith.constant dense<0.000000e+00> : vector<64xf32>
    %64 = vector.multi_reduction <add>, %63, %cst_18 [1] : vector<64x64xf32> to vector<64xf32>
    %65 = vector.shape_cast %64 : vector<64xf32> to vector<64x1xf32>
    %66 = vector.extract_strided_slice %44 {offsets = [2, 0], sizes = [1, 32], strides = [1, 1]} : vector<8x32xf32> to vector<1x32xf32>
    %67 = vector.broadcast %65 : vector<64x1xf32> to vector<64x32xf32>
    %68 = vector.broadcast %66 : vector<1x32xf32> to vector<64x32xf32>
    %69 = arith.mulf %67, %68 : vector<64x32xf32>
    %70 = arith.addf %61, %69 : vector<64x32xf32>
    %cst_19 = arith.constant dense<0.000000e+00> : vector<64x64xf32>
    %71 = tpu.matmul %62, %42, %cst_19 {dimension_numbers = #tpu.dot_dimension_numbers<[1], [0], [0], [1], [0, 0, 1, 1], [], []>} : vector<64x64xf32>, vector<64x64xf32>, vector<64x64xf32> -> vector<64x64xf32>
    %72 = arith.mulf %71, %43 : vector<64x64xf32>
    %cst_20 = arith.constant dense<0.000000e+00> : vector<64xf32>
    %73 = vector.multi_reduction <add>, %72, %cst_20 [1] : vector<64x64xf32> to vector<64xf32>
    %74 = vector.shape_cast %73 : vector<64xf32> to vector<64x1xf32>
    %75 = vector.extract_strided_slice %44 {offsets = [3, 0], sizes = [1, 32], strides = [1, 1]} : vector<8x32xf32> to vector<1x32xf32>
    %76 = vector.broadcast %74 : vector<64x1xf32> to vector<64x32xf32>
    %77 = vector.broadcast %75 : vector<1x32xf32> to vector<64x32xf32>
    %78 = arith.mulf %76, %77 : vector<64x32xf32>
    %79 = arith.addf %70, %78 : vector<64x32xf32>
    %cst_21 = arith.constant dense<0.000000e+00> : vector<64x64xf32>
    %80 = tpu.matmul %71, %42, %cst_21 {dimension_numbers = #tpu.dot_dimension_numbers<[1], [0], [0], [1], [0, 0, 1, 1], [], []>} : vector<64x64xf32>, vector<64x64xf32>, vector<64x64xf32> -> vector<64x64xf32>
    %81 = arith.mulf %80, %43 : vector<64x64xf32>
    %cst_22 = arith.constant dense<0.000000e+00> : vector<64xf32>
    %82 = vector.multi_reduction <add>, %81, %cst_22 [1] : vector<64x64xf32> to vector<64xf32>
    %83 = vector.shape_cast %82 : vector<64xf32> to vector<64x1xf32>
    %84 = vector.extract_strided_slice %44 {offsets = [4, 0], sizes = [1, 32], strides = [1, 1]} : vector<8x32xf32> to vector<1x32xf32>
    %85 = vector.broadcast %83 : vector<64x1xf32> to vector<64x32xf32>
    %86 = vector.broadcast %84 : vector<1x32xf32> to vector<64x32xf32>
    %87 = arith.mulf %85, %86 : vector<64x32xf32>
    %88 = arith.addf %79, %87 : vector<64x32xf32>
    %cst_23 = arith.constant dense<0.000000e+00> : vector<64x64xf32>
    %89 = tpu.matmul %80, %42, %cst_23 {dimension_numbers = #tpu.dot_dimension_numbers<[1], [0], [0], [1], [0, 0, 1, 1], [], []>} : vector<64x64xf32>, vector<64x64xf32>, vector<64x64xf32> -> vector<64x64xf32>
    %90 = arith.mulf %89, %43 : vector<64x64xf32>
    %cst_24 = arith.constant dense<0.000000e+00> : vector<64xf32>
    %91 = vector.multi_reduction <add>, %90, %cst_24 [1] : vector<64x64xf32> to vector<64xf32>
    %92 = vector.shape_cast %91 : vector<64xf32> to vector<64x1xf32>
    %93 = vector.extract_strided_slice %44 {offsets = [5, 0], sizes = [1, 32], strides = [1, 1]} : vector<8x32xf32> to vector<1x32xf32>
    %94 = vector.broadcast %92 : vector<64x1xf32> to vector<64x32xf32>
    %95 = vector.broadcast %93 : vector<1x32xf32> to vector<64x32xf32>
    %96 = arith.mulf %94, %95 : vector<64x32xf32>
    %97 = arith.addf %88, %96 : vector<64x32xf32>
    %cst_25 = arith.constant dense<0.000000e+00> : vector<64x64xf32>
    %98 = tpu.matmul %89, %42, %cst_25 {dimension_numbers = #tpu.dot_dimension_numbers<[1], [0], [0], [1], [0, 0, 1, 1], [], []>} : vector<64x64xf32>, vector<64x64xf32>, vector<64x64xf32> -> vector<64x64xf32>
    %99 = arith.mulf %98, %43 : vector<64x64xf32>
    %cst_26 = arith.constant dense<0.000000e+00> : vector<64xf32>
    %100 = vector.multi_reduction <add>, %99, %cst_26 [1] : vector<64x64xf32> to vector<64xf32>
    %101 = vector.shape_cast %100 : vector<64xf32> to vector<64x1xf32>
    %102 = vector.extract_strided_slice %44 {offsets = [6, 0], sizes = [1, 32], strides = [1, 1]} : vector<8x32xf32> to vector<1x32xf32>
    %103 = vector.broadcast %101 : vector<64x1xf32> to vector<64x32xf32>
    %104 = vector.broadcast %102 : vector<1x32xf32> to vector<64x32xf32>
    %105 = arith.mulf %103, %104 : vector<64x32xf32>
    %106 = arith.addf %97, %105 : vector<64x32xf32>
    %cst_27 = arith.constant dense<0.000000e+00> : vector<64x64xf32>
    %107 = tpu.matmul %98, %42, %cst_27 {dimension_numbers = #tpu.dot_dimension_numbers<[1], [0], [0], [1], [0, 0, 1, 1], [], []>} : vector<64x64xf32>, vector<64x64xf32>, vector<64x64xf32> -> vector<64x64xf32>
    %108 = arith.mulf %107, %43 : vector<64x64xf32>
    %cst_28 = arith.constant dense<0.000000e+00> : vector<64xf32>
    %109 = vector.multi_reduction <add>, %108, %cst_28 [1] : vector<64x64xf32> to vector<64xf32>
    %110 = vector.shape_cast %109 : vector<64xf32> to vector<64x1xf32>
    %111 = vector.extract_strided_slice %44 {offsets = [7, 0], sizes = [1, 32], strides = [1, 1]} : vector<8x32xf32> to vector<1x32xf32>
    %112 = vector.broadcast %110 : vector<64x1xf32> to vector<64x32xf32>
    %113 = vector.broadcast %111 : vector<1x32xf32> to vector<64x32xf32>
    %114 = arith.mulf %112, %113 : vector<64x32xf32>
    %115 = arith.addf %106, %114 : vector<64x32xf32>
    %c0_29 = arith.constant 0 : index
    %c0_30 = arith.constant 0 : index
    %116 = vector.load %arg3[%c0_29, %c0_30] : memref<1x32xf32, #tpu.memory_space<vmem>>, vector<1x32xf32>
    %117 = vector.broadcast %116 : vector<1x32xf32> to vector<64x32xf32>
    %118 = arith.addf %115, %117 : vector<64x32xf32>
    %c0_31 = arith.constant 0 : index
    %c0_32 = arith.constant 0 : index
    %119 = vector.load %arg4[%c0_31, %c0_32] : memref<64x32xf32, #tpu.memory_space<vmem>>, vector<64x32xf32>
    tpu.vector_store %arg4[%c0_31, %c0_32], %118 {strides = array<i32>} : memref<64x32xf32, #tpu.memory_space<vmem>>, vector<64x32xf32>,
    return
  }
  func.func @transform_0(%arg0: i32) -> (i32, i32) {
    %c0_i32 = arith.constant 0 : i32
    %c0_i32_0 = arith.constant 0 : i32
    return %arg0, %c0_i32 : i32, i32
  }
  func.func @transform_1(%arg0: i32) -> (i32, i32) {
    %c0_i32 = arith.constant 0 : i32
    %c0_i32_0 = arith.constant 0 : i32
    %c0_i32_1 = arith.constant 0 : i32
    return %c0_i32, %c0_i32_0 : i32, i32
  }
  func.func @transform_2(%arg0: i32) -> (i32, i32) {
    %c0_i32 = arith.constant 0 : i32
    %c0_i32_0 = arith.constant 0 : i32
    %c0_i32_1 = arith.constant 0 : i32
    return %c0_i32, %c0_i32_0 : i32, i32
  }
  func.func @transform_3(%arg0: i32) -> (i32, i32) {
    %c0_i32 = arith.constant 0 : i32
    %c0_i32_0 = arith.constant 0 : i32
    return %arg0, %c0_i32 : i32, i32
  }
}

</mosaic_0001>

<bundles_post_ra>
// kernel: tpu_custom_call.1
= control target key start
LH: loop header
LB: loop body
LE: loop exit
PB: predicated region body
PF: predicated region fallthrough
CT: control target
= control target key end

     0   :  { %vm94_vm0 = vcmask 130048   ;;  %v67_v8 = vlaneseq  ;;  %vm54_vm1 = vcmask 523264   ;;  %v2069_v32 = vmov 0.0   ;;  %s2819_s0 = inlined_call_operand.vmem [shape: f32[64,16], index: 0, kind: input, shape index: {}]   ;;  %s2820_s1 = inlined_call_operand.vmem [shape: f32[8,32], index: 1, kind: input, shape index: {}]   ;;  %s2821_s2 = inlined_call_operand.vmem [shape: f32[1,32], index: 2, kind: input, shape index: {}]   ;;  %s2822_s3 = inlined_call_operand.vmem [shape: f32[64,32], index: 3, kind: output, shape index: {}]  }
   0x1   :  { %v14_v0 = vld [vmem:[%s2819_s0] sm:$0xff]  ;;  %v15_v1 = vld [vmem:[%s2819_s0 + $0x8] sm:$0xff]  ;;  %v16_v2 = vld [vmem:[%s2819_s0 + $0x10] sm:$0xff] }
   0x2   :  { %22 = vxpose.xlu0.b32.start [1/8] (short) (narrow) %v14_v0, 16  ;;  %v17_v3 = vld [vmem:[%s2819_s0 + $0x18] sm:$0xff]  ;;  %v18_v4 = vld [vmem:[%s2819_s0 + $0x20] sm:$0xff]  ;;  %v19_v5 = vld [vmem:[%s2819_s0 + $0x28] sm:$0xff]  ;;  %1738 = vmatprep.mubr.msk.f32.mxu0 %vm94_vm0, %v14_v0  ;;  %v2115_v9 = vand.u32 127, %v67_v8  ;;  %v2120_v22 = vshrl.u32 %v67_v8, 7 }
   0x3   :  { %v20_v6 = vld [vmem:[%s2819_s0 + $0x30] sm:$0xff]  ;;  %v21_v7 = vld [vmem:[%s2819_s0 + $0x38] sm:$0xff] }
   0x4   :  { %v80_v11 = vcvt.s32.f32 %v2115_v9  ;;  %v2125_v26 = vadd.s32 8, %v2120_v22  ;;  %v78_v29 = vcvt.s32.f32 %v2120_v22  ;;  %v2138_v39 = vadd.s32 24, %v2120_v22 }
   0x5   :  { %v2141_v40 = vadd.s32 16, %v2120_v22  ;;  %v2146_v43 = vadd.s32 40, %v2120_v22  ;;  %v2149_v44 = vadd.s32 32, %v2120_v22  ;;  %v2154_v51 = vadd.s32 56, %v2120_v22 }
   0x6   :  { %23 = vxpose.xlu0.b32.cont [2/8] (short) (narrow) %v15_v1, 16  ;;  %v81_v16 = vadd.f32 0.5, %v80_v11  ;;  %v79_v30 = vcvt.s32.f32 %v2125_v26  ;;  %v225_v41 = vcvt.s32.f32 %v2138_v39  ;;  %v230_v46 = vadd.f32 0.5, %v78_v29 }
   0x7   :  { %v224_v42 = vcvt.s32.f32 %v2141_v40  ;;  %v227_v49 = vcvt.s32.f32 %v2146_v43  ;;  %v226_v50 = vcvt.s32.f32 %v2149_v44  ;;  %v2157_v54 = vadd.s32 48, %v2120_v22 }
   0x8   :  { %v82_v19 = vmul.f32 0.0625, %v81_v16  ;;  %v231_v45 = vadd.f32 0.5, %v79_v30  ;;  %v233_v47 = vadd.f32 0.5, %v225_v41  ;;  %v238_v53 = vmul.f32 0.0625, %v230_v46 }
   0x9   :  { %v232_v48 = vadd.f32 0.5, %v224_v42  ;;  %v235_v57 = vadd.f32 0.5, %v227_v49  ;;  %v234_v58 = vadd.f32 0.5, %v226_v50  ;;  %v229_v59 = vcvt.s32.f32 %v2154_v51 }
   0xa   :  { %24 = vxpose.xlu0.b32.cont [3/8] (short) (narrow) %v16_v2, 16  ;;  %v2122_v23 = vfloor.f32 %v82_v19  ;;  %v239_v52 = vmul.f32 0.0625, %v231_v45  ;;  %v241_v55 = vmul.f32 0.0625, %v233_v47  ;;  %v246_v61 = vfloor.f32 %v238_v53 }
   0xb   :  { %v240_v56 = vmul.f32 0.0625, %v232_v48  ;;  %v228_v62 = vcvt.s32.f32 %v2157_v54  ;;  %vm304_vm6 = vcmp.eq.s32.totalorder %v2125_v26, %v2115_v9  ;;  %vm303_vm8 = vcmp.eq.s32.totalorder %v2120_v22, %v2115_v9 }
   0xc   :  { %v84_v27 = vmul.f32 16.0, %v2122_v23  ;;  %v247_v60 = vfloor.f32 %v239_v52  ;;  %v249_v63 = vfloor.f32 %v241_v55  ;;  %vm254_vm5 = vcmp.eq.f32.partialorder %v246_v61, %v2122_v23 }
   0xd   :  { %v248_v0 = vfloor.f32 %v240_v56  ;;  %vm306_vm11 = vcmp.eq.s32.totalorder %v2138_v39, %v2115_v9  ;;  %vm305_vm12 = vcmp.eq.s32.totalorder %v2141_v40, %v2115_v9 }
   0xe   :  { %25 = vxpose.xlu0.b32.cont [4/8] (short) (narrow) %v17_v3, 16  ;;  %v85_v31 = vsub.f32 %v80_v11, %v84_v27  ;;  %vm255_vm4 = vcmp.eq.f32.partialorder %v247_v60, %v2122_v23  ;;  %vm2166_vm7 = vcmp.eq.f32.partialorder %v249_v63, %v2122_v23 }
   0xf   :  { %vm2173_vm9 = vcmp.eq.f32.partialorder %v248_v0, %v2122_v23  ;;  %vm2179_vm10 = vmpackc.low %vm255_vm4, %vm254_vm5 }
  0x10   :  { %vm86_vm2 = vcmp.eq.f32.partialorder %v85_v31, %v78_v29  ;;  %vm87_vm3 = vcmp.eq.f32.partialorder %v85_v31, %v79_v30  ;;  %vm2214_vm13 = vmpackc.low %vm2166_vm7, %vm2173_vm9 }
  0x11   :  { %v1521_v33 = vsel %vm86_vm2, 1.0, %v2069_v32  ;;  %v1522_v34 = vsel %vm87_vm3, 1.0, %v2069_v32  ;;  %vm308_vm3 = vcmp.eq.s32.totalorder %v2146_v43, %v2115_v9 }
  0x12   :  { %26 = vxpose.xlu0.b32.cont [5/8] (short) (narrow) %v18_v4, 16 }
  0x16   :  { %27 = vxpose.xlu0.b32.cont [6/8] (short) (narrow) %v19_v5, 16 }
  0x1a   :  { %28 = vxpose.xlu0.b32.cont [7/8] (short) (narrow) %v20_v6, 16 }
  0x1e   :  { %29 = vxpose.xlu0.b32.end [8/8] (short) (narrow) %v21_v7, 16 }
  0x82   :  { %v38_v10 = vpop.trf.xlu0 }
  0x83   :  { %v55_v13 = vsel %vm54_vm1, %v38_v10, 0.0 }
  0x86   :  { %v39_v12 = vpop.trf.xlu0 }
  0x87   :  { %v56_v14 = vsel %vm54_vm1, %v39_v12, 0.0 }
  0x88   :  { %v57_v15 = vadd.f32 %v56_v14, %v55_v13 }
  0x8a   :  { %v58_v17 = vrot.slane %v57_v15, 4 }
  0x8c   :  { %v59_v18 = vadd.f32 %v58_v17, %v57_v15 }
  0x8e   :  { %v60_v20 = vrot.slane %v59_v18, 2 }
  0x90   :  { %v61_v21 = vadd.f32 %v60_v20, %v59_v18 }
  0x92   :  { %v62_v24 = vrot.slane %v61_v21, 1 }
  0x94   :  { %v63_v25 = vadd.f32 %v62_v24, %v61_v21 }
  0x96   :  { %v64_v28 = vmax.f32 %v63_v25, 1.0 }
  0x98   :  { %2067 = vrcp.f32 %v64_v28 }
  0xa2   :  { %v2068_v35 = vpop.eup %2067 }
  0xa3   :  { %v92_v36 = vmul.f32 %v2068_v35, %v1521_v33  ;;  %v93_v37 = vmul.f32 %v2068_v35, %v1522_v34 }
  0xa5   :  { %v1918_v38 = vpack.c.bf16 %v93_v37, %v92_v36 }
  0xa7   :  { %1919 = vmatprep.subr.bf16.mxu0 %v1918_v38 }
  0xa8   :  { %1921 = vmatpush3.bf16.msra.mxu0 %v1918_v38 }
  0xab   :  { %1739 = vmatmul.mubr.msk.f32.vlgmr.msra.gmra.mrb[0].mxu0 %vm94_vm0, %v15_v1  ;;  %v243_v1 = vmul.f32 0.0625, %v235_v57 }
  0xac   :  { %1741 = vmatprep.mubr.msk.f32.mxu0 %vm94_vm0, %v16_v2  ;;  %v242_v2 = vmul.f32 0.0625, %v234_v58 }
  0xad   :  { %v251_v12 = vfloor.f32 %v243_v1 }
  0xae   :  { %v250_v13 = vfloor.f32 %v242_v2 }
  0xaf   :  { %1742 = vmatmul.mubr.msk.f32.gmra.mrb[2].mxu0 %vm94_vm0, %v17_v3  ;;  %v237_v3 = vadd.f32 0.5, %v229_v59  ;;  %vm2219_vm14 = vcmp.eq.f32.partialorder %v251_v12, %v2122_v23 }
  0xb0   :  { %1744 = vmatprep.mubr.msk.f32.mxu0 %vm94_vm0, %v18_v4  ;;  %v236_v4 = vadd.f32 0.5, %v228_v62  ;;  %vm2224_vm15 = vcmp.eq.f32.partialorder %v250_v13, %v2122_v23 }
  0xb1   :  { %v245_v14 = vmul.f32 0.0625, %v237_v3  ;;  %vm2262_vm2 = vmpackc.low %vm2219_vm14, %vm2224_vm15 }
  0xb2   :  { %v244_v18 = vmul.f32 0.0625, %v236_v4 }
  0xb3   :  { %1745 = vmatmul.mubr.msk.f32.gmra.mrb[4].mxu0 %vm94_vm0, %v19_v5  ;;  %v253_v30 = vfloor.f32 %v245_v14 }
  0xb4   :  { %1747 = vmatprep.mubr.msk.f32.mxu0 %vm94_vm0, %v20_v6  ;;  %v252_v34 = vfloor.f32 %v244_v18 }
  0xb7   :  { %1748 = vmatmul.mubr.msk.f32.gmra.mrb[6].mxu0 %vm94_vm0, %v21_v7  ;;  %vm307_vm0 = vcmp.eq.s32.totalorder %v2149_v44, %v2115_v9 }
 0x17e   :  { %v1740_v5 = vpop.f32.mrb[0].mxu0 }
 0x17f   :  { %v2177_v8 = vsel %vm255_vm4, %v1740_v5, 0.0  ;;  %v185_v10 = vpop.f32.mrb[1].mxu0  ;;  %vm261_vm4 = vcmp.eq.f32.partialorder %v253_v30, %v2122_v23 }
 0x180   :  { %v2183_v15 = vsel %vm254_vm5, %v185_v10, 0.0  ;;  %v2185_v16 = vpack.c.bf16 %v1740_v5, %v185_v10  ;;  %v312_v17 = vsel %vm304_vm6, %v2177_v8, 0.0  ;;  %vm2282_vm5 = vcmp.eq.f32.partialorder %v252_v34, %v2122_v23 }
 0x181   :  { %1766 = vmatprep.mubr.msk.f32.mxu1 %vm54_vm1, %v2183_v15  ;;  %v322_v19 = vsel %vm54_vm1, %v312_v17, 0.0  ;;  %v311_v20 = vsel %vm303_vm8, %v2183_v15, 0.0  ;;  %vm309_vm6 = vcmp.eq.s32.totalorder %v2157_v54, %v2115_v9  ;;  %vm310_vm8 = vcmp.eq.s32.totalorder %v2154_v51, %v2115_v9 }
 0x182   :  { %323 = vadd.xlane.f32.xlu1 %v322_v19  ;;  %v1743_v21 = vpop.f32.mrb[2].mxu0  ;;  %1924 = vmatprep.subr.msk.bf16.mxu1 %vm2179_vm10, %v2185_v16  ;;  %v319_v24 = vsel %vm54_vm1, %v311_v20, 0.0 }
 0x183   :  { %v2202_v25 = vsel %vm2166_vm7, %v1743_v21, 0.0  ;;  %1948 = vmatprep.subr.msk.bf16.mxu0 %vm2179_vm10, %v2185_v16  ;;  %1927 = vmatpush3.bf16.msk.msra.mxu1 %vm2179_vm10, %v2185_v16  ;;  %v195_v26 = vpop.f32.mrb[3].mxu0  ;;  %vm2305_vm7 = vmpackc.low %vm261_vm4, %vm2282_vm5 }
 0x184   :  { %1951 = vmatpush3.bf16.msk.msra.mxu0 %vm2179_vm10, %v2185_v16  ;;  %320 = vadd.xlane.f32.xlu0 %v319_v24  ;;  %v2233_v31 = vsel %vm2173_vm9, %v195_v26, 0.0  ;;  %v2235_v32 = vpack.c.bf16 %v1743_v21, %v195_v26  ;;  %v314_v33 = vsel %vm306_vm11, %v2202_v25, 0.0 }
 0x185   :  { %v328_v35 = vsel %vm54_vm1, %v314_v33, 0.0  ;;  %v313_v37 = vsel %vm305_vm12, %v2233_v31, 0.0 }
 0x186   :  { %329 = vadd.xlane.f32.xlu1 %v328_v35  ;;  %v1746_v36 = vpop.f32.mrb[4].mxu0  ;;  %1930 = vmatprep.subr.msk.bf16.mxu1 %vm2214_vm13, %v2235_v32  ;;  %v325_v45 = vsel %vm54_vm1, %v313_v37, 0.0 }
 0x187   :  { %v2253_v38 = vsel %vm2219_vm14, %v1746_v36, 0.0  ;;  %1954 = vmatprep.subr.msk.bf16.mxu0 %vm2214_vm13, %v2235_v32  ;;  %v205_v39 = vpop.f32.mrb[5].mxu0  ;;  %1933 = vmatpush3.bf16.msk.msra.mxu1 %vm2214_vm13, %v2235_v32 }
 0x188   :  { %v2273_v40 = vsel %vm2224_vm15, %v205_v39, 0.0  ;;  %v2275_v42 = vpack.c.bf16 %v1746_v36, %v205_v39  ;;  %1957 = vmatpush3.bf16.msk.msra.mxu0 %vm2214_vm13, %v2235_v32  ;;  %v316_v48 = vsel %vm308_vm3, %v2253_v38, 0.0 }
 0x189   :  { %v315_v43 = vsel %vm307_vm0, %v2273_v40, 0.0  ;;  %v334_v54 = vsel %vm54_vm1, %v316_v48, 0.0 }
 0x18a   :  { %326 = vadd.xlane.f32.xlu1 %v325_v45  ;;  %v1749_v46 = vpop.f32.mrb[6].mxu0  ;;  %1936 = vmatprep.subr.msk.bf16.mxu1 %vm2262_vm2, %v2275_v42  ;;  %v331_v47 = vsel %vm54_vm1, %v315_v43, 0.0 }
 0x18b   :  { %v2295_v23 = vsel %vm261_vm4, %v1749_v46, 0.0  ;;  %1960 = vmatprep.subr.msk.bf16.mxu0 %vm2262_vm2, %v2275_v42  ;;  %1939 = vmatpush3.bf16.msk.msra.mxu1 %vm2262_vm2, %v2275_v42  ;;  %v215_v49 = vpop.f32.mrb[7].mxu0 }
 0x18c   :  { %1963 = vmatpush3.bf16.msk.msra.mxu0 %vm2262_vm2, %v2275_v42  ;;  %332 = vadd.xlane.f32.xlu0 %v331_v47  ;;  %v2316_v52 = vsel %vm2282_vm5, %v215_v49, 0.0  ;;  %v2318_v53 = vpack.c.bf16 %v1749_v46, %v215_v49  ;;  %v318_v51 = vsel %vm310_vm8, %v2295_v23, 0.0 }
 0x18d   :  { %v317_v55 = vsel %vm309_vm6, %v2316_v52, 0.0  ;;  %v340_v56 = vsel %vm54_vm1, %v318_v51, 0.0 }
 0x18e   :  { %335 = vadd.xlane.f32.xlu1 %v334_v54  ;;  %1942 = vmatprep.subr.msk.bf16.mxu1 %vm2305_vm7, %v2318_v53  ;;  %v337_v9 = vsel %vm54_vm1, %v317_v55, 0.0 }
 0x18f   :  { %1966 = vmatprep.subr.msk.bf16.mxu0 %vm2305_vm7, %v2318_v53  ;;  %1945 = vmatpush3.bf16.msk.msra.mxu1 %vm2305_vm7, %v2318_v53 }
 0x190   :  { %1969 = vmatpush3.bf16.msk.msra.mxu0 %vm2305_vm7, %v2318_v53  ;;  %338 = vadd.xlane.f32.xlu0 %v337_v9 }
 0x191   :  { %1972 = vmatprep.subr.msk.bf16.mxu1 %vm2179_vm10, %v2185_v16  ;;  %1996 = vmatprep.subr.msk.bf16.mxu0 %vm2179_vm10, %v2185_v16 }
 0x192   :  { %341 = vadd.xlane.f32.xlu1 %v340_v56  ;;  %1767 = vmatmul.mubr.msk.f32.vlgmr.msra.gmra.mrb[0].mxu1 %vm54_vm1, %v2177_v8 }
 0x193   :  { %1769 = vmatprep.mubr.msk.f32.mxu1 %vm54_vm1, %v2233_v31  ;;  %1975 = vmatpush3.bf16.msk.msra.mxu1 %vm2179_vm10, %v2185_v16 }
 0x194   :  { %1978 = vmatprep.subr.msk.bf16.mxu1 %vm2214_vm13, %v2235_v32 }
 0x196   :  { %1770 = vmatmul.mubr.msk.f32.gmra.mrb[2].mxu1 %vm54_vm1, %v2202_v25 }
 0x197   :  { %1772 = vmatprep.mubr.msk.f32.mxu1 %vm54_vm1, %v2273_v40  ;;  %1981 = vmatpush3.bf16.msk.msra.mxu1 %vm2214_vm13, %v2235_v32 }
 0x198   :  { %1984 = vmatprep.subr.msk.bf16.mxu1 %vm2262_vm2, %v2275_v42 }
 0x19a   :  { %1773 = vmatmul.mubr.msk.f32.gmra.mrb[4].mxu1 %vm54_vm1, %v2253_v38 }
 0x19b   :  { %1775 = vmatprep.mubr.msk.f32.mxu1 %vm54_vm1, %v2316_v52  ;;  %1987 = vmatpush3.bf16.msk.msra.mxu1 %vm2262_vm2, %v2275_v42 }
 0x19c   :  { %1990 = vmatprep.subr.msk.bf16.mxu1 %vm2305_vm7, %v2318_v53 }
 0x19e   :  { %1776 = vmatmul.mubr.msk.f32.gmra.mrb[6].mxu1 %vm54_vm1, %v2295_v23 }
 0x19f   :  { %1993 = vmatpush3.bf16.msk.msra.mxu1 %vm2305_vm7, %v2318_v53 }
 0x1a0   :  { %2020 = vmatprep.subr.msk.bf16.mxu1 %vm2179_vm10, %v2185_v16 }
 0x1c5   :  { %270 = vxpose.xlu1.b32.start [1/8] (short) (narrow) %v2183_v15, 64 }
 0x1c9   :  { %271 = vxpose.xlu1.b32.cont [2/8] (short) (narrow) %v2177_v8, 64 }
 0x1cd   :  { %272 = vxpose.xlu1.b32.cont [3/8] (short) (narrow) %v2233_v31, 64 }
 0x1d1   :  { %273 = vxpose.xlu1.b32.cont [4/8] (short) (narrow) %v2202_v25, 64 }
 0x1d5   :  { %274 = vxpose.xlu1.b32.cont [5/8] (short) (narrow) %v2273_v40, 64 }
 0x1d9   :  { %275 = vxpose.xlu1.b32.cont [6/8] (short) (narrow) %v2253_v38, 64 }
 0x1dd   :  { %276 = vxpose.xlu1.b32.cont [7/8] (short) (narrow) %v2316_v52, 64 }
 0x1e1   :  { %277 = vxpose.xlu1.b32.end [8/8] (short) (narrow) %v2295_v23, 64 }
 0x20f   :  { %v2389_v57 = vpop.xlane.xlu1 %323 }
 0x211   :  { %v321_v51 = vpop.xlane.xlu0 %320 }
 0x213   :  { %v2391_v58 = vpop.xlane.xlu1 %329 }
 0x217   :  { %v2393_v59 = vpop.xlane.xlu1 %326 }
 0x219   :  { %v333_v56 = vpop.xlane.xlu0 %332 }
 0x21b   :  { %v2395_v60 = vpop.xlane.xlu1 %335 }
 0x21f   :  { %v2397_v61 = vpop.xlane.xlu1 %341 }
 0x245   :  { %v2399_v62 = vpop.trf.xlu1 }
 0x246   :  { %v355_v63 = vmul.f32 %v2399_v62, %v2183_v15 }
 0x248   :  { %v363_v0 = vsel %vm54_vm1, %v355_v63, 0.0  ;;  %v345_v63 = vsub.s32 0, %v2120_v22 }
 0x249   :  { %v2404_v1 = vpop.trf.xlu1  ;;  %364 = vadd.xlane.f32.xlu0 %v363_v0  ;;  %v389_v0 = vsub.s32 1, %v2120_v22 }
 0x24a   :  { %v356_v2 = vmul.f32 %v2404_v1, %v2177_v8 }
 0x24c   :  { %v366_v3 = vsel %vm54_vm1, %v356_v2, 0.0  ;;  %v2492_v2 = vld [vmem:[%s2820_s1] sm:$0xff] }
 0x24d   :  { %367 = vadd.xlane.f32.xlu1 %v366_v3  ;;  %v2409_v4 = vpop.trf.xlu1  ;;  %v2494_v3 = vpop.xlane.xlu0 %338 }
 0x24e   :  { %v357_v5 = vmul.f32 %v2409_v4, %v2233_v31 }
 0x250   :  { %v369_v6 = vsel %vm54_vm1, %v357_v5, 0.0  ;;  %v2497_v5 = vrot.slane %v2492_v2, %v345_v63 }
 0x251   :  { %v2414_v7 = vpop.trf.xlu1  ;;  %370 = vadd.xlane.f32.xlu0 %v369_v6  ;;  %v2500_v6 = vrot.slane %v2492_v2, %v389_v0 }
 0x252   :  { %v358_v10 = vmul.f32 %v2414_v7, %v2202_v25 }
 0x254   :  { %v372_v12 = vsel %vm54_vm1, %v358_v10, 0.0 }
 0x255   :  { %373 = vadd.xlane.f32.xlu1 %v372_v12  ;;  %v2419_v8 = vpop.trf.xlu1  ;;  %v347_v12 = vmul.f32 %v2497_v5, %v321_v51 }
 0x256   :  { %v359_v13 = vmul.f32 %v2419_v8, %v2273_v40 }
 0x258   :  { %v375_v14 = vsel %vm54_vm1, %v359_v13, 0.0 }
 0x259   :  { %v2424_v15 = vpop.trf.xlu1  ;;  %376 = vadd.xlane.f32.xlu0 %v375_v14 }
 0x25a   :  { %v360_v17 = vmul.f32 %v2424_v15, %v2253_v38 }
 0x25c   :  { %v378_v18 = vsel %vm54_vm1, %v360_v17, 0.0 }
 0x25d   :  { %379 = vadd.xlane.f32.xlu1 %v378_v18  ;;  %v2429_v19 = vpop.trf.xlu1  ;;  %v348_v18 = vmul.f32 %v2497_v5, %v2389_v57  ;;  %v351_v57 = vmul.f32 %v2497_v5, %v333_v56 }
 0x25e   :  { %v361_v20 = vmul.f32 %v2429_v19, %v2316_v52 }
 0x260   :  { %v381_v21 = vsel %vm54_vm1, %v361_v20, 0.0 }
 0x261   :  { %v2434_v24 = vpop.trf.xlu1  ;;  %382 = vadd.xlane.f32.xlu0 %v381_v21 }
 0x262   :  { %v362_v25 = vmul.f32 %v2434_v24, %v2295_v23 }
 0x264   :  { %v384_v26 = vsel %vm54_vm1, %v362_v25, 0.0 }
 0x265   :  { %v1768_v28 = vpop.f32.mrb[0].mxu1  ;;  %385 = vadd.xlane.f32.xlu1 %v384_v26  ;;  %v349_v26 = vmul.f32 %v2497_v5, %v2393_v59  ;;  %v352_v59 = vmul.f32 %v2497_v5, %v2395_v60 }
 0x266   :  { %v537_v29 = vmul.f32 %v1768_v28, %v2404_v1  ;;  %v497_v30 = vpop.f32.mrb[1].mxu1 }
 0x267   :  { %v536_v31 = vmul.f32 %v497_v30, %v2399_v62  ;;  %1794 = vmatprep.mubr.msk.f32.mxu0 %vm54_vm1, %v497_v30 }
 0x268   :  { %1795 = vmatmul.mubr.msk.f32.vlgmr.msra.gmra.mrb[8].mxu0 %vm54_vm1, %v1768_v28  ;;  %v547_v33 = vsel %vm54_vm1, %v537_v29, 0.0 }
 0x269   :  { %1999 = vmatpush3.bf16.msk.msra.mxu0 %vm2179_vm10, %v2185_v16  ;;  %v1771_v34 = vpop.f32.mrb[2].mxu1  ;;  %548 = vadd.xlane.f32.xlu1 %v547_v33  ;;  %v544_v35 = vsel %vm54_vm1, %v536_v31, 0.0  ;;  %v350_v31 = vmul.f32 %v2497_v5, %v2391_v58  ;;  %v354_v58 = vmul.f32 %v2497_v5, %v2397_v61 }
 0x26a   :  { %v539_v36 = vmul.f32 %v1771_v34, %v2414_v7  ;;  %2002 = vmatprep.subr.msk.bf16.mxu0 %vm2214_vm13, %v2235_v32  ;;  %v507_v37 = vpop.f32.mrb[3].mxu1  ;;  %545 = vadd.xlane.f32.xlu0 %v544_v35 }
 0x26b   :  { %v538_v38 = vmul.f32 %v507_v37, %v2409_v4  ;;  %1797 = vmatprep.mubr.msk.f32.mxu0 %vm54_vm1, %v507_v37 }
 0x26c   :  { %1798 = vmatmul.mubr.msk.f32.gmra.mrb[10].mxu0 %vm54_vm1, %v1771_v34  ;;  %v553_v39 = vsel %vm54_vm1, %v539_v36, 0.0 }
 0x26d   :  { %2005 = vmatpush3.bf16.msk.msra.mxu0 %vm2214_vm13, %v2235_v32  ;;  %v1774_v40 = vpop.f32.mrb[4].mxu1  ;;  %554 = vadd.xlane.f32.xlu1 %v553_v39  ;;  %v550_v44 = vsel %vm54_vm1, %v538_v38, 0.0 }
 0x26e   :  { %v541_v45 = vmul.f32 %v1774_v40, %v2424_v15  ;;  %2008 = vmatprep.subr.msk.bf16.mxu0 %vm2262_vm2, %v2275_v42  ;;  %v517_v43 = vpop.f32.mrb[5].mxu1  ;;  %551 = vadd.xlane.f32.xlu0 %v550_v44  ;;  %v570_v44 = vsub.s32 2, %v2120_v22 }
 0x26f   :  { %v540_v46 = vmul.f32 %v517_v43, %v2419_v8  ;;  %1800 = vmatprep.mubr.msk.f32.mxu0 %vm54_vm1, %v517_v43 }
 0x270   :  { %1801 = vmatmul.mubr.msk.f32.gmra.mrb[12].mxu0 %vm54_vm1, %v1774_v40  ;;  %v559_v47 = vsel %vm54_vm1, %v541_v45, 0.0 }
 0x271   :  { %2011 = vmatpush3.bf16.msk.msra.mxu0 %vm2262_vm2, %v2275_v42  ;;  %560 = vadd.xlane.f32.xlu1 %v559_v47  ;;  %v1777_v48 = vpop.f32.mrb[6].mxu1  ;;  %v556_v23 = vsel %vm54_vm1, %v540_v46, 0.0  ;;  %v2525_v47 = vrot.slane %v2492_v2, %v570_v44 }
 0x272   :  { %2014 = vmatprep.subr.msk.bf16.mxu0 %vm2305_vm7, %v2318_v53  ;;  %v543_v49 = vmul.f32 %v1777_v48, %v2434_v24  ;;  %v527_v52 = vpop.f32.mrb[7].mxu1  ;;  %557 = vadd.xlane.f32.xlu0 %v556_v23 }
 0x273   :  { %v542_v54 = vmul.f32 %v527_v52, %v2429_v19  ;;  %1803 = vmatprep.mubr.msk.f32.mxu0 %vm54_vm1, %v527_v52 }
 0x274   :  { %1804 = vmatmul.mubr.msk.f32.gmra.mrb[14].mxu0 %vm54_vm1, %v1777_v48  ;;  %v565_v55 = vsel %vm54_vm1, %v543_v49, 0.0 }
 0x275   :  { %2017 = vmatpush3.bf16.msk.msra.mxu0 %vm2305_vm7, %v2318_v53  ;;  %566 = vadd.xlane.f32.xlu1 %v565_v55  ;;  %v562_v9 = vsel %vm54_vm1, %v542_v54, 0.0 }
 0x276   :  { %2044 = vmatprep.subr.msk.bf16.mxu0 %vm2179_vm10, %v2185_v16  ;;  %563 = vadd.xlane.f32.xlu0 %v562_v9 }
 0x2d6   :  { %v365_v10 = vpop.xlane.xlu0 %364 }
 0x2d7   :  { %v391_v13 = vmul.f32 %v2500_v6, %v365_v10 }
 0x2d9   :  { %v399_v14 = vadd.f32 %v391_v13, %v347_v12 }
 0x2da   :  { %v368_v17 = vpop.xlane.xlu1 %367 }
 0x2db   :  { %v392_v20 = vmul.f32 %v2500_v6, %v368_v17 }
 0x2dd   :  { %v400_v21 = vadd.f32 %v392_v20, %v348_v18 }
 0x2de   :  { %v371_v25 = vpop.xlane.xlu0 %370 }
 0x2df   :  { %v393_v28 = vmul.f32 %v2500_v6, %v371_v25 }
 0x2e1   :  { %v401_v29 = vadd.f32 %v393_v28, %v349_v26 }
 0x2e2   :  { %v374_v30 = vpop.xlane.xlu1 %373 }
 0x2e3   :  { %v394_v33 = vmul.f32 %v2500_v6, %v374_v30 }
 0x2e5   :  { %v402_v34 = vadd.f32 %v394_v33, %v350_v31 }
 0x2e6   :  { %v377_v35 = vpop.xlane.xlu0 %376 }
 0x2e7   :  { %v395_v36 = vmul.f32 %v2500_v6, %v377_v35 }
 0x2e9   :  { %v403_v37 = vadd.f32 %v395_v36, %v351_v57 }
 0x2ea   :  { %v380_v38 = vpop.xlane.xlu1 %379 }
 0x2eb   :  { %v396_v39 = vmul.f32 %v2500_v6, %v380_v38 }
 0x2ed   :  { %v404_v40 = vadd.f32 %v396_v39, %v352_v59 }
 0x2ee   :  { %v2521_v43 = vpop.xlane.xlu0 %382 }
 0x2f2   :  { %v386_v45 = vpop.xlane.xlu1 %385 }
 0x2f3   :  { %v398_v46 = vmul.f32 %v2500_v6, %v386_v45 }
 0x2f5   :  { %v2527_v48 = vadd.f32 %v398_v46, %v354_v58 }
 0x2f6   :  { %v549_v23 = vpop.xlane.xlu1 %548 }
 0x2f7   :  { %v573_v60 = vmul.f32 %v2525_v47, %v549_v23  ;;  %v546_v49 = vpop.xlane.xlu0 %545 }
 0x2f8   :  { %v572_v52 = vmul.f32 %v2525_v47, %v546_v49 }
 0x2f9   :  { %v2531_v54 = vadd.f32 %v573_v60, %v400_v21 }
 0x2fa   :  { %v2533_v55 = vadd.f32 %v572_v52, %v399_v14  ;;  %v555_v61 = vpop.xlane.xlu1 %554 }
 0x2fb   :  { %v575_v9 = vmul.f32 %v2525_v47, %v555_v61  ;;  %v552_v51 = vpop.xlane.xlu0 %551 }
 0x2fc   :  { %v574_v56 = vmul.f32 %v2525_v47, %v552_v51 }
 0x2fd   :  { %v2537_v63 = vadd.f32 %v575_v9, %v402_v34 }
 0x2fe   :  { %v2539_v0 = vadd.f32 %v574_v56, %v401_v29  ;;  %v561_v10 = vpop.xlane.xlu1 %560 }
 0x2ff   :  { %v577_v12 = vmul.f32 %v2525_v47, %v561_v10  ;;  %v558_v13 = vpop.xlane.xlu0 %557 }
 0x300   :  { %v576_v17 = vmul.f32 %v2525_v47, %v558_v13 }
 0x301   :  { %v2543_v18 = vadd.f32 %v577_v12, %v404_v40 }
 0x302   :  { %v2545_v14 = vadd.f32 %v576_v17, %v403_v37 }
 0x33b   :  { %v1796_v20 = vpop.f32.mrb[8].mxu0 }
 0x33c   :  { %v718_v21 = vmul.f32 %v1796_v20, %v2404_v1  ;;  %v678_v25 = vpop.f32.mrb[9].mxu0 }
 0x33d   :  { %v717_v26 = vmul.f32 %v678_v25, %v2399_v62  ;;  %1822 = vmatprep.mubr.msk.f32.mxu1 %vm54_vm1, %v678_v25 }
 0x33e   :  { %1823 = vmatmul.mubr.msk.f32.vlgmr.msra.gmra.mrb[8].mxu1 %vm54_vm1, %v1796_v20  ;;  %v728_v28 = vsel %vm54_vm1, %v718_v21, 0.0 }
 0x33f   :  { %2023 = vmatpush3.bf16.msk.msra.mxu1 %vm2179_vm10, %v2185_v16  ;;  %v1799_v29 = vpop.f32.mrb[10].mxu0  ;;  %729 = vadd.xlane.f32.xlu1 %v728_v28  ;;  %v725_v30 = vsel %vm54_vm1, %v717_v26, 0.0 }
 0x340   :  { %v720_v31 = vmul.f32 %v1799_v29, %v2414_v7  ;;  %2026 = vmatprep.subr.msk.bf16.mxu1 %vm2214_vm13, %v2235_v32  ;;  %v688_v33 = vpop.f32.mrb[11].mxu0  ;;  %726 = vadd.xlane.f32.xlu0 %v725_v30 }
 0x341   :  { %v719_v34 = vmul.f32 %v688_v33, %v2409_v4  ;;  %1825 = vmatprep.mubr.msk.f32.mxu1 %vm54_vm1, %v688_v33 }
 0x342   :  { %1826 = vmatmul.mubr.msk.f32.gmra.mrb[10].mxu1 %vm54_vm1, %v1799_v29  ;;  %v734_v35 = vsel %vm54_vm1, %v720_v31, 0.0 }
 0x343   :  { %2029 = vmatpush3.bf16.msk.msra.mxu1 %vm2214_vm13, %v2235_v32  ;;  %v1802_v57 = vpop.f32.mrb[12].mxu0  ;;  %735 = vadd.xlane.f32.xlu1 %v734_v35  ;;  %v731_v36 = vsel %vm54_vm1, %v719_v34, 0.0 }
 0x344   :  { %v722_v37 = vmul.f32 %v1802_v57, %v2424_v15  ;;  %2032 = vmatprep.subr.msk.bf16.mxu1 %vm2262_vm2, %v2275_v42  ;;  %v698_v38 = vpop.f32.mrb[13].mxu0  ;;  %732 = vadd.xlane.f32.xlu0 %v731_v36 }
 0x345   :  { %v721_v59 = vmul.f32 %v698_v38, %v2419_v8  ;;  %1828 = vmatprep.mubr.msk.f32.mxu1 %vm54_vm1, %v698_v38 }
 0x346   :  { %1829 = vmatmul.mubr.msk.f32.gmra.mrb[12].mxu1 %vm54_vm1, %v1802_v57  ;;  %v740_v39 = vsel %vm54_vm1, %v722_v37, 0.0 }
 0x347   :  { %2035 = vmatpush3.bf16.msk.msra.mxu1 %vm2262_vm2, %v2275_v42  ;;  %741 = vadd.xlane.f32.xlu1 %v740_v39  ;;  %v1805_v40 = vpop.f32.mrb[14].mxu0  ;;  %v737_v44 = vsel %vm54_vm1, %v721_v59, 0.0 }
 0x348   :  { %2038 = vmatprep.subr.msk.bf16.mxu1 %vm2305_vm7, %v2318_v53  ;;  %v724_v45 = vmul.f32 %v1805_v40, %v2434_v24  ;;  %v708_v58 = vpop.f32.mrb[15].mxu0  ;;  %738 = vadd.xlane.f32.xlu0 %v737_v44 }
 0x349   :  { %v723_v46 = vmul.f32 %v708_v58, %v2429_v19  ;;  %1831 = vmatprep.mubr.msk.f32.mxu1 %vm54_vm1, %v708_v58 }
 0x34a   :  { %1832 = vmatmul.mubr.msk.f32.gmra.mrb[14].mxu1 %vm54_vm1, %v1805_v40  ;;  %v746_v23 = vsel %vm54_vm1, %v724_v45, 0.0 }
 0x34b   :  { %2041 = vmatpush3.bf16.msk.msra.mxu1 %vm2305_vm7, %v2318_v53  ;;  %747 = vadd.xlane.f32.xlu1 %v746_v23  ;;  %v743_v60 = vsel %vm54_vm1, %v723_v46, 0.0 }
 0x34c   :  { %744 = vadd.xlane.f32.xlu0 %v743_v60 }
 0x411   :  { %v1824_v49 = vpop.f32.mrb[8].mxu1 }
 0x412   :  { %v899_v52 = vmul.f32 %v1824_v49, %v2404_v1  ;;  %v859_v61 = vpop.f32.mrb[9].mxu1 }
 0x413   :  { %v898_v9 = vmul.f32 %v859_v61, %v2399_v62  ;;  %1850 = vmatprep.mubr.msk.f32.mxu0 %vm54_vm1, %v859_v61 }
 0x414   :  { %1851 = vmatmul.mubr.msk.f32.vlgmr.msra.gmra.mrb[16].mxu0 %vm54_vm1, %v1824_v49  ;;  %v909_v51 = vsel %vm54_vm1, %v899_v52, 0.0 }
 0x415   :  { %2047 = vmatpush3.bf16.msk.msra.mxu0 %vm2179_vm10, %v2185_v16  ;;  %v1827_v56 = vpop.f32.mrb[10].mxu1  ;;  %910 = vadd.xlane.f32.xlu1 %v909_v51  ;;  %v906_v10 = vsel %vm54_vm1, %v898_v9, 0.0 }
 0x416   :  { %v901_v12 = vmul.f32 %v1827_v56, %v2414_v7  ;;  %2050 = vmatprep.subr.msk.bf16.mxu0 %vm2214_vm13, %v2235_v32  ;;  %v869_v13 = vpop.f32.mrb[11].mxu1  ;;  %907 = vadd.xlane.f32.xlu0 %v906_v10 }
 0x417   :  { %v900_v17 = vmul.f32 %v869_v13, %v2409_v4  ;;  %1853 = vmatprep.mubr.msk.f32.mxu0 %vm54_vm1, %v869_v13 }
 0x418   :  { %1854 = vmatmul.mubr.msk.f32.gmra.mrb[18].mxu0 %vm54_vm1, %v1827_v56  ;;  %v915_v11 = vsel %vm54_vm1, %v901_v12, 0.0 }
 0x419   :  { %2053 = vmatpush3.bf16.msk.msra.mxu0 %vm2214_vm13, %v2235_v32  ;;  %v1830_v16 = vpop.f32.mrb[12].mxu1  ;;  %916 = vadd.xlane.f32.xlu1 %v915_v11  ;;  %v912_v20 = vsel %vm54_vm1, %v900_v17, 0.0 }
 0x41a   :  { %v903_v21 = vmul.f32 %v1830_v16, %v2424_v15  ;;  %2056 = vmatprep.subr.msk.bf16.mxu0 %vm2262_vm2, %v2275_v42  ;;  %v879_v25 = vpop.f32.mrb[13].mxu1  ;;  %913 = vadd.xlane.f32.xlu0 %v912_v20 }
 0x41b   :  { %v902_v26 = vmul.f32 %v879_v25, %v2419_v8  ;;  %1856 = vmatprep.mubr.msk.f32.mxu0 %vm54_vm1, %v879_v25 }
 0x41c   :  { %1857 = vmatmul.mubr.msk.f32.gmra.mrb[20].mxu0 %vm54_vm1, %v1830_v16  ;;  %v921_v27 = vsel %vm54_vm1, %v903_v21, 0.0 }
 0x41d   :  { %2059 = vmatpush3.bf16.msk.msra.mxu0 %vm2262_vm2, %v2275_v42  ;;  %922 = vadd.xlane.f32.xlu1 %v921_v27  ;;  %v1833_v32 = vpop.f32.mrb[14].mxu1  ;;  %v918_v28 = vsel %vm54_vm1, %v902_v26, 0.0 }
 0x41e   :  { %2062 = vmatprep.subr.msk.bf16.mxu0 %vm2305_vm7, %v2318_v53  ;;  %v905_v29 = vmul.f32 %v1833_v32, %v2434_v24  ;;  %v889_v30 = vpop.f32.mrb[15].mxu1  ;;  %919 = vadd.xlane.f32.xlu0 %v918_v28 }
 0x41f   :  { %v904_v31 = vmul.f32 %v889_v30, %v2429_v19  ;;  %1859 = vmatprep.mubr.msk.f32.mxu0 %vm54_vm1, %v889_v30 }
 0x420   :  { %1860 = vmatmul.mubr.msk.f32.gmra.mrb[22].mxu0 %vm54_vm1, %v1833_v32  ;;  %v927_v41 = vsel %vm54_vm1, %v905_v29, 0.0 }
 0x421   :  { %2065 = vmatpush3.bf16.msk.msra.mxu0 %vm2305_vm7, %v2318_v53  ;;  %928 = vadd.xlane.f32.xlu1 %v927_v41  ;;  %v924_v42 = vsel %vm54_vm1, %v904_v31, 0.0 }
 0x422   :  { %925 = vadd.xlane.f32.xlu0 %v924_v42 }
 0x4e7   :  { %v1852_v33 = vpop.f32.mrb[16].mxu0 }
 0x4e8   :  { %v1080_v34 = vmul.f32 %v1852_v33, %v2404_v1  ;;  %v1040_v35 = vpop.f32.mrb[17].mxu0 }
 0x4e9   :  { %v1079_v57 = vmul.f32 %v1040_v35, %v2399_v62  ;;  %1878 = vmatprep.mubr.msk.f32.mxu1 %vm54_vm1, %v1040_v35 }
 0x4ea   :  { %1879 = vmatmul.mubr.msk.f32.vlgmr.msra.gmra.mrb[16].mxu1 %vm54_vm1, %v1852_v33  ;;  %v1090_v36 = vsel %vm54_vm1, %v1080_v34, 0.0 }
 0x4eb   :  { %v1855_v37 = vpop.f32.mrb[18].mxu0  ;;  %1091 = vadd.xlane.f32.xlu1 %v1090_v36  ;;  %v1087_v50 = vsel %vm54_vm1, %v1079_v57, 0.0 }
 0x4ec   :  { %v1082_v53 = vmul.f32 %v1855_v37, %v2414_v7  ;;  %v1050_v38 = vpop.f32.mrb[19].mxu0  ;;  %1088 = vadd.xlane.f32.xlu0 %v1087_v50 }
 0x4ed   :  { %v1081_v59 = vmul.f32 %v1050_v38, %v2409_v4  ;;  %1881 = vmatprep.mubr.msk.f32.mxu1 %vm54_vm1, %v1050_v38 }
 0x4ee   :  { %1882 = vmatmul.mubr.msk.f32.gmra.mrb[18].mxu1 %vm54_vm1, %v1855_v37  ;;  %v1096_v39 = vsel %vm54_vm1, %v1082_v53, 0.0 }
 0x4ef   :  { %v1858_v40 = vpop.f32.mrb[20].mxu0  ;;  %1097 = vadd.xlane.f32.xlu1 %v1096_v39  ;;  %v1093_v44 = vsel %vm54_vm1, %v1081_v59, 0.0 }
 0x4f0   :  { %v1084_v45 = vmul.f32 %v1858_v40, %v2424_v15  ;;  %v1060_v58 = vpop.f32.mrb[21].mxu0  ;;  %1094 = vadd.xlane.f32.xlu0 %v1093_v44 }
 0x4f1   :  { %v1083_v46 = vmul.f32 %v1060_v58, %v2419_v8  ;;  %1884 = vmatprep.mubr.msk.f32.mxu1 %vm54_vm1, %v1060_v58 }
 0x4f2   :  { %1885 = vmatmul.mubr.msk.f32.gmra.mrb[20].mxu1 %vm54_vm1, %v1858_v40  ;;  %v1102_v23 = vsel %vm54_vm1, %v1084_v45, 0.0 }
 0x4f3   :  { %1103 = vadd.xlane.f32.xlu1 %v1102_v23  ;;  %v1861_v60 = vpop.f32.mrb[22].mxu0  ;;  %v1099_v49 = vsel %vm54_vm1, %v1083_v46, 0.0 }
 0x4f4   :  { %v1086_v52 = vmul.f32 %v1861_v60, %v2434_v24  ;;  %v1070_v61 = vpop.f32.mrb[23].mxu0  ;;  %1100 = vadd.xlane.f32.xlu0 %v1099_v49 }
 0x4f5   :  { %v1085_v9 = vmul.f32 %v1070_v61, %v2429_v19  ;;  %1887 = vmatprep.mubr.msk.f32.mxu1 %vm54_vm1, %v1070_v61 }
 0x4f6   :  { %1888 = vmatmul.mubr.msk.f32.gmra.mrb[22].mxu1 %vm54_vm1, %v1861_v60  ;;  %v1108_v51 = vsel %vm54_vm1, %v1086_v52, 0.0 }
 0x4f7   :  { %1109 = vadd.xlane.f32.xlu1 %v1108_v51  ;;  %v1105_v56 = vsel %vm54_vm1, %v1085_v9, 0.0 }
 0x4f8   :  { %1106 = vadd.xlane.f32.xlu0 %v1105_v56 }
 0x5bd   :  { %v1880_v10 = vpop.f32.mrb[16].mxu1 }
 0x5be   :  { %v1261_v12 = vmul.f32 %v1880_v10, %v2404_v1  ;;  %v1221_v13 = vpop.f32.mrb[17].mxu1 }
 0x5bf   :  { %v1260_v17 = vmul.f32 %v1221_v13, %v2399_v62  ;;  %1906 = vmatprep.mubr.msk.f32.mxu0 %vm54_vm1, %v1221_v13 }
 0x5c0   :  { %1907 = vmatmul.mubr.msk.f32.vlgmr.msra.gmra.mrb[24].mxu0 %vm54_vm1, %v1880_v10  ;;  %v1271_v11 = vsel %vm54_vm1, %v1261_v12, 0.0  ;;  %v567_v12 = vpop.xlane.xlu1 %566 }
 0x5c1   :  { %v1883_v16 = vpop.f32.mrb[18].mxu1  ;;  %1272 = vadd.xlane.f32.xlu1 %v1271_v11  ;;  %v1268_v20 = vsel %vm54_vm1, %v1260_v17, 0.0 }
 0x5c2   :  { %v1263_v21 = vmul.f32 %v1883_v16, %v2414_v7  ;;  %v1231_v25 = vpop.f32.mrb[19].mxu1  ;;  %1269 = vadd.xlane.f32.xlu0 %v1268_v20 }
 0x5c3   :  { %v1262_v26 = vmul.f32 %v1231_v25, %v2409_v4  ;;  %1909 = vmatprep.mubr.msk.f32.mxu0 %vm54_vm1, %v1231_v25 }
 0x5c4   :  { %1910 = vmatmul.mubr.msk.f32.gmra.mrb[26].mxu0 %vm54_vm1, %v1883_v16  ;;  %v1277_v27 = vsel %vm54_vm1, %v1263_v21, 0.0  ;;  %v730_v13 = vpop.xlane.xlu1 %729 }
 0x5c5   :  { %v1886_v32 = vpop.f32.mrb[20].mxu1  ;;  %1278 = vadd.xlane.f32.xlu1 %v1277_v27  ;;  %v1274_v28 = vsel %vm54_vm1, %v1262_v26, 0.0 }
 0x5c6   :  { %v1265_v29 = vmul.f32 %v1886_v32, %v2424_v15  ;;  %v1241_v30 = vpop.f32.mrb[21].mxu1  ;;  %1275 = vadd.xlane.f32.xlu0 %v1274_v28 }
 0x5c7   :  { %v1264_v31 = vmul.f32 %v1241_v30, %v2419_v8  ;;  %1912 = vmatprep.mubr.msk.f32.mxu0 %vm54_vm1, %v1241_v30 }
 0x5c8   :  { %1913 = vmatmul.mubr.msk.f32.gmra.mrb[28].mxu0 %vm54_vm1, %v1886_v32  ;;  %v1283_v41 = vsel %vm54_vm1, %v1265_v29, 0.0  ;;  %v736_v11 = vpop.xlane.xlu1 %735 }
 0x5c9   :  { %1284 = vadd.xlane.f32.xlu1 %v1283_v41  ;;  %v1889_v42 = vpop.f32.mrb[22].mxu1  ;;  %v1280_v33 = vsel %vm54_vm1, %v1264_v31, 0.0 }
 0x5ca   :  { %v1267_v34 = vmul.f32 %v1889_v42, %v2434_v24  ;;  %v1251_v35 = vpop.f32.mrb[23].mxu1  ;;  %1281 = vadd.xlane.f32.xlu0 %v1280_v33 }
 0x5cb   :  { %v1266_v57 = vmul.f32 %v1251_v35, %v2429_v19  ;;  %1915 = vmatprep.mubr.msk.f32.mxu0 %vm54_vm1, %v1251_v35 }
 0x5cc   :  { %1916 = vmatmul.mubr.msk.f32.gmra.mrb[30].mxu0 %vm54_vm1, %v1889_v42  ;;  %v1289_v36 = vsel %vm54_vm1, %v1267_v34, 0.0  ;;  %v742_v20 = vpop.xlane.xlu1 %741 }
 0x5cd   :  { %1290 = vadd.xlane.f32.xlu1 %v1289_v36  ;;  %v1286_v37 = vsel %vm54_vm1, %v1266_v57, 0.0 }
 0x5ce   :  { %1287 = vadd.xlane.f32.xlu0 %v1286_v37 }
 0x5d0   :  { %v748_v25 = vpop.xlane.xlu1 %747 }
 0x5d4   :  { %v911_v26 = vpop.xlane.xlu1 %910 }
 0x5d8   :  { %v917_v32 = vpop.xlane.xlu1 %916 }
 0x5dc   :  { %v923_v28 = vpop.xlane.xlu1 %922 }
 0x5e0   :  { %v2701_v30 = vpop.xlane.xlu1 %928 }
 0x5e4   :  { %v1092_v41 = vpop.xlane.xlu1 %1091 }
 0x5e8   :  { %v1098_v33 = vpop.xlane.xlu1 %1097 }
 0x5ec   :  { %v2707_v35 = vpop.xlane.xlu1 %1103 }
 0x5f0   :  { %v2711_v36 = vpop.xlane.xlu1 %1109 }
 0x693   :  { %v1908_v50 = vpop.f32.mrb[24].mxu0 }
 0x694   :  { %v1442_v53 = vmul.f32 %v1908_v50, %v2404_v1  ;;  %v1402_v38 = vpop.f32.mrb[25].mxu0  ;;  %v1273_v50 = vpop.xlane.xlu1 %1272 }
 0x695   :  { %v1441_v59 = vmul.f32 %v1402_v38, %v2399_v62  ;;  %v751_v38 = vsub.s32 3, %v2120_v22 }
 0x696   :  { %v1452_v39 = vsel %vm54_vm1, %v1442_v53, 0.0 }
 0x697   :  { %v1911_v40 = vpop.f32.mrb[26].mxu0  ;;  %1453 = vadd.xlane.f32.xlu1 %v1452_v39  ;;  %v1449_v44 = vsel %vm54_vm1, %v1441_v59, 0.0  ;;  %v752_v59 = vrot.slane %v2492_v2, %v751_v38 }
 0x698   :  { %v1444_v45 = vmul.f32 %v1911_v40, %v2414_v7  ;;  %v1412_v58 = vpop.f32.mrb[27].mxu0  ;;  %1450 = vadd.xlane.f32.xlu0 %v1449_v44  ;;  %v1279_v39 = vpop.xlane.xlu1 %1278  ;;  %v932_v40 = vsub.s32 4, %v2120_v22 }
 0x699   :  { %v1443_v46 = vmul.f32 %v1412_v58, %v2409_v4  ;;  %v1113_v58 = vsub.s32 5, %v2120_v22 }
 0x69a   :  { %v1458_v23 = vsel %vm54_vm1, %v1444_v45, 0.0  ;;  %v397_v45 = vmul.f32 %v2500_v6, %v2521_v43 }
 0x69b   :  { %v1914_v60 = vpop.f32.mrb[28].mxu0  ;;  %1459 = vadd.xlane.f32.xlu1 %v1458_v23  ;;  %v1455_v1 = vsel %vm54_vm1, %v1443_v46, 0.0  ;;  %v353_v46 = vmul.f32 %v2497_v5, %v2494_v3  ;;  %v579_v23 = vmul.f32 %v2525_v47, %v567_v12  ;;  %v2732_v43 = vrot.slane %v2492_v2, %v1113_v58 }
 0x69c   :  { %v1446_v62 = vmul.f32 %v1914_v60, %v2424_v15  ;;  %v1422_v49 = vpop.f32.mrb[29].mxu0  ;;  %1456 = vadd.xlane.f32.xlu0 %v1455_v1  ;;  %v754_v1 = vmul.f32 %v752_v59, %v730_v13  ;;  %v1475_v12 = vsub.s32 7, %v2120_v22 }
 0x69d   :  { %v1445_v52 = vmul.f32 %v1422_v49, %v2419_v8  ;;  %v564_v8 = vpop.xlane.xlu0 %563  ;;  %v933_v49 = vrot.slane %v2492_v2, %v932_v40  ;;  %v587_v3 = vadd.f32 %v579_v23, %v2527_v48 }
 0x69e   :  { %v1464_v61 = vsel %vm54_vm1, %v1446_v62, 0.0  ;;  %v578_v60 = vmul.f32 %v2525_v47, %v564_v8  ;;  %v762_v47 = vadd.f32 %v754_v1, %v2531_v54  ;;  %v1116_v54 = vmul.f32 %v2732_v43, %v1092_v41 }
 0x69f   :  { %1465 = vadd.xlane.f32.xlu1 %v1464_v61  ;;  %v1917_v7 = vpop.f32.mrb[30].mxu0  ;;  %v1461_v9 = vsel %vm54_vm1, %v1445_v52, 0.0  ;;  %v1294_v52 = vsub.s32 6, %v2120_v22  ;;  %v405_v61 = vadd.f32 %v397_v45, %v353_v46  ;;  %v937_v38 = vmul.f32 %v933_v49, %v917_v32 }
 0x6a0   :  { %v1448_v4 = vmul.f32 %v1917_v7, %v2434_v24  ;;  %v1432_v51 = vpop.f32.mrb[31].mxu0  ;;  %1462 = vadd.xlane.f32.xlu0 %v1461_v9  ;;  %v756_v7 = vmul.f32 %v752_v59, %v736_v11  ;;  %v2729_v9 = vpop.xlane.xlu1 %1284  ;;  %v1118_v41 = vmul.f32 %v2732_v43, %v1098_v33 }
 0x6a1   :  { %v1447_v56 = vmul.f32 %v1432_v51, %v2429_v19  ;;  %v727_v17 = vpop.xlane.xlu0 %726  ;;  %v586_v5 = vadd.f32 %v578_v60, %v405_v61  ;;  %v758_v51 = vmul.f32 %v752_v59, %v742_v20 }
 0x6a2   :  { %v1470_v10 = vsel %vm54_vm1, %v1448_v4, 0.0  ;;  %v753_v62 = vmul.f32 %v752_v59, %v727_v17  ;;  %v764_v8 = vadd.f32 %v756_v7, %v2537_v63  ;;  %v760_v17 = vmul.f32 %v752_v59, %v748_v25 }
 0x6a3   :  { %1471 = vadd.xlane.f32.xlu1 %v1470_v10  ;;  %v1467_v15 = vsel %vm54_vm1, %v1447_v56, 0.0  ;;  %v935_v10 = vmul.f32 %v933_v49, %v911_v26  ;;  %v766_v20 = vadd.f32 %v758_v51, %v2543_v18  ;;  %v939_v26 = vmul.f32 %v933_v49, %v923_v28 }
 0x6a4   :  { %1468 = vadd.xlane.f32.xlu0 %v1467_v15  ;;  %v761_v56 = vadd.f32 %v753_v62, %v2533_v55  ;;  %v2740_v15 = vrot.slane %v2492_v2, %v1294_v52  ;;  %v1291_v45 = vpop.xlane.xlu1 %1290  ;;  %v2750_v25 = vrot.slane %v2492_v2, %v1475_v12  ;;  %v1627_v52 = vld [vmem:[%s2821_s2] ss:$0 sm:$0xff]  ;;  %vm1508_vm1 = vcmask 261120  }
 0x6a5   :  { %v733_v16 = vpop.xlane.xlu0 %732  ;;  %v943_v58 = vadd.f32 %v935_v10, %v762_v47 }
 0x6a6   :  { %v755_v6 = vmul.f32 %v752_v59, %v733_v16  ;;  %v1297_v63 = vmul.f32 %v2740_v15, %v1273_v50  ;;  %v1301_v51 = vmul.f32 %v2740_v15, %v2729_v9 }
 0x6a7   :  { %v1124_v28 = vadd.f32 %v1116_v54, %v943_v58 }
 0x6a8   :  { %v763_v16 = vadd.f32 %v755_v6, %v2539_v0 }
 0x6a9   :  { %v739_v21 = vpop.xlane.xlu0 %738  ;;  %v1305_v23 = vadd.f32 %v1297_v63, %v1124_v28 }
 0x6aa   :  { %v757_v13 = vmul.f32 %v752_v59, %v739_v21 }
 0x6ac   :  { %v765_v0 = vadd.f32 %v757_v13, %v2545_v14  ;;  %v1299_v14 = vmul.f32 %v2740_v15, %v1279_v39  ;;  %v1120_v39 = vmul.f32 %v2732_v43, %v2707_v35 }
 0x6ad   :  { %v745_v24 = vpop.xlane.xlu0 %744 }
 0x6ae   :  { %v759_v48 = vmul.f32 %v752_v59, %v745_v24  ;;  %v768_v24 = vadd.f32 %v760_v17, %v587_v3  ;;  %v947_v59 = vadd.f32 %v939_v26, %v766_v20  ;;  %v1122_v17 = vmul.f32 %v2732_v43, %v2711_v36 }
 0x6af   :  { %v1303_v36 = vmul.f32 %v2740_v15, %v1291_v45 }
 0x6b0   :  { %v767_v18 = vadd.f32 %v759_v48, %v586_v5 }
 0x6b1   :  { %v908_v27 = vpop.xlane.xlu0 %907 }
 0x6b2   :  { %v934_v11 = vmul.f32 %v933_v49, %v908_v27 }
 0x6b4   :  { %v942_v27 = vadd.f32 %v934_v11, %v761_v56 }
 0x6b5   :  { %v914_v19 = vpop.xlane.xlu0 %913 }
 0x6b6   :  { %v936_v55 = vmul.f32 %v933_v49, %v914_v19  ;;  %v945_v19 = vadd.f32 %v937_v38, %v764_v8 }
 0x6b8   :  { %v1126_v7 = vadd.f32 %v1118_v41, %v945_v19 }
 0x6b9   :  { %v920_v29 = vpop.xlane.xlu0 %919 }
 0x6ba   :  { %v938_v22 = vmul.f32 %v933_v49, %v920_v29  ;;  %v1307_v47 = vadd.f32 %v1299_v14, %v1126_v7 }
 0x6bc   :  { %v946_v2 = vadd.f32 %v938_v22, %v765_v0 }
 0x6bd   :  { %v2703_v31 = vpop.xlane.xlu0 %925 }
 0x6be   :  { %v940_v61 = vmul.f32 %v933_v49, %v2703_v31 }
 0x6c0   :  { %v948_v11 = vadd.f32 %v940_v61, %v767_v18 }
 0x6c1   :  { %v1089_v42 = vpop.xlane.xlu0 %1088 }
 0x6c2   :  { %v1115_v40 = vmul.f32 %v2732_v43, %v1089_v42  ;;  %v944_v42 = vadd.f32 %v936_v55, %v763_v16 }
 0x6c4   :  { %v1123_v29 = vadd.f32 %v1115_v40, %v942_v27 }
 0x6c5   :  { %v2705_v34 = vpop.xlane.xlu0 %1094 }
 0x6c6   :  { %v1117_v50 = vmul.f32 %v2732_v43, %v2705_v34 }
 0x6c8   :  { %v1125_v3 = vadd.f32 %v1117_v50, %v944_v42 }
 0x6c9   :  { %v2709_v57 = vpop.xlane.xlu0 %1100 }
 0x6cd   :  { %v2713_v37 = vpop.xlane.xlu0 %1106 }
 0x6ce   :  { %v1121_v48 = vmul.f32 %v2732_v43, %v2713_v37 }
 0x6d0   :  { %v1129_v0 = vadd.f32 %v1121_v48, %v948_v11 }
 0x6d1   :  { %v1270_v53 = vpop.xlane.xlu0 %1269 }
 0x6d2   :  { %v1296_v32 = vmul.f32 %v2740_v15, %v1270_v53  ;;  %v941_v53 = vmul.f32 %v933_v49, %v2701_v30  ;;  %v1119_v30 = vmul.f32 %v2732_v43, %v2709_v57  ;;  %v1128_v57 = vadd.f32 %v1120_v39, %v947_v59 }
 0x6d4   :  { %v1304_v62 = vadd.f32 %v1296_v32, %v1123_v29  ;;  %v949_v13 = vadd.f32 %v941_v53, %v768_v24  ;;  %v1127_v16 = vadd.f32 %v1119_v30, %v946_v2  ;;  %v1309_v54 = vadd.f32 %v1301_v51, %v1128_v57 }
 0x6d5   :  { %v2718_v44 = vpop.xlane.xlu0 %1275 }
 0x6d6   :  { %v1298_v33 = vmul.f32 %v2740_v15, %v2718_v44  ;;  %v1130_v43 = vadd.f32 %v1122_v17, %v949_v13 }
 0x6d8   :  { %v1306_v49 = vadd.f32 %v1298_v33, %v1125_v3  ;;  %v1311_v27 = vadd.f32 %v1303_v36, %v1130_v43 }
 0x6d9   :  { %v2734_v4 = vpop.xlane.xlu0 %1281 }
 0x6da   :  { %v1300_v35 = vmul.f32 %v2740_v15, %v2734_v4 }
 0x6dc   :  { %v1308_v40 = vadd.f32 %v1300_v35, %v1127_v16 }
 0x6dd   :  { %v1288_v21 = vpop.xlane.xlu0 %1287 }
 0x6de   :  { %v1302_v58 = vmul.f32 %v2740_v15, %v1288_v21 }
 0x6e0   :  { %v1310_v18 = vadd.f32 %v1302_v58, %v1129_v0 }
 0x724   :  { %v1454_v46 = vpop.xlane.xlu1 %1453 }
 0x725   :  { %v1478_v60 = vmul.f32 %v2750_v25, %v1454_v46  ;;  %v1451_v1 = vpop.xlane.xlu0 %1450 }
 0x726   :  { %v1477_v34 = vmul.f32 %v2750_v25, %v1451_v1 }
 0x727   :  { %v1486_v6 = vadd.f32 %v1478_v60, %v1305_v23 }
 0x728   :  { %v1485_v5 = vadd.f32 %v1477_v34, %v1304_v62  ;;  %v1460_v44 = vpop.xlane.xlu1 %1459 }
 0x729   :  { %v1501_v56 = vadd.f32 %v1627_v52, %v1486_v6  ;;  %v1480_v10 = vmul.f32 %v2750_v25, %v1460_v44  ;;  %v1457_v31 = vpop.xlane.xlu0 %1456 }
 0x72a   :  { %v1500_v12 = vadd.f32 %v1627_v52, %v1485_v5  ;;  %v1479_v8 = vmul.f32 %v2750_v25, %v1457_v31 }
 0x72b   :  { %1510 = vst.msk [vmem:[%s2822_s3 + $0x8] sm:$0xff] %vm1508_vm1, %v1501_v56  ;;  %v1488_v9 = vadd.f32 %v1480_v10, %v1307_v47 }
 0x72c   :  { %1509 = vst.msk [vmem:[%s2822_s3] sm:$0xff] %vm1508_vm1, %v1500_v12  ;;  %v1487_v4 = vadd.f32 %v1479_v8, %v1306_v49  ;;  %v1466_v38 = vpop.xlane.xlu1 %1465 }
 0x72d   :  { %v1503_v20 = vadd.f32 %v1627_v52, %v1488_v9  ;;  %v1482_v55 = vmul.f32 %v2750_v25, %v1466_v38  ;;  %v1463_v26 = vpop.xlane.xlu0 %1462 }
 0x72e   :  { %v1502_v22 = vadd.f32 %v1627_v52, %v1487_v4  ;;  %v1481_v37 = vmul.f32 %v2750_v25, %v1463_v26 }
 0x72f   :  { %1512 = vst.msk [vmem:[%s2822_s3 + $0x18] sm:$0xff] %vm1508_vm1, %v1503_v20  ;;  %v1490_v63 = vadd.f32 %v1482_v55, %v1309_v54 }
 0x730   :  { %1511 = vst.msk [vmem:[%s2822_s3 + $0x10] sm:$0xff] %vm1508_vm1, %v1502_v22  ;;  %v1489_v45 = vadd.f32 %v1481_v37, %v1308_v40  ;;  %v1472_v24 = vpop.xlane.xlu1 %1471 }
 0x731   :  { %v1505_v15 = vadd.f32 %v1627_v52, %v1490_v63  ;;  %v1484_v21 = vmul.f32 %v2750_v25, %v1472_v24  ;;  %v1469_v32 = vpop.xlane.xlu0 %1468 }
 0x732   :  { %v1504_v19 = vadd.f32 %v1627_v52, %v1489_v45  ;;  %v1483_v28 = vmul.f32 %v2750_v25, %v1469_v32 }
 0x733   :  { %1514 = vst.msk [vmem:[%s2822_s3 + $0x28] sm:$0xff] %vm1508_vm1, %v1505_v15  ;;  %v1492_v41 = vadd.f32 %v1484_v21, %v1311_v27 }
 0x734   :  { %1513 = vst.msk [vmem:[%s2822_s3 + $0x20] sm:$0xff] %vm1508_vm1, %v1504_v19  ;;  %v1491_v42 = vadd.f32 %v1483_v28, %v1310_v18 }
 0x735   :  { %v1507_v59 = vadd.f32 %v1627_v52, %v1492_v41 }
 0x736   :  { %v1506_v29 = vadd.f32 %v1627_v52, %v1491_v42 }
 0x737   :  { %1516 = vst.msk [vmem:[%s2822_s3 + $0x38] sm:$0xff] %vm1508_vm1, %v1507_v59 }
 0x738   :  { %1515 = vst.msk [vmem:[%s2822_s3 + $0x30] sm:$0xff] %vm1508_vm1, %v1506_v29 }

</bundles_post_ra>
